<compile_context>
chip_gen: v6e
topology: v6e:2x2x1
jax: 0.10.0
libtpu: 0.0.40
codegen_flags: <defaults>
</compile_context>

<pallas_src>
import functools

import jax
import jax.numpy as jnp
from jax import lax
from jax.experimental import pallas as pl
from jax.experimental.pallas import tpu as pltpu


# --------------------------------------------------------------------------
# Kernel
# --------------------------------------------------------------------------
def _attn_head_kernel(x_ref, w_ref, wb_ref, vw_ref, vb_ref, o_ref,
                      m_sc, l_sc, acc_sc, *,
                      seq_len, chunk, tanh_dtype, approx_recip):
    # x_ref  : (TB, TS, F)  feature block (stream dtype: f32 or bf16)
    # w_ref  : (F, H)       W.weight^T   (stream dtype)
    # wb_ref : (1, H)       W.bias       (f32, VMEM)
    # vw_ref : (1, H)       V.weight     (f32, VMEM)
    # vb_ref : (1,)         V.bias       (f32, SMEM scalar)
    # o_ref  : (TB, F)      output context vectors
    # m_sc/l_sc : (TB, 1)   online-softmax running max / denom (f32)
    # acc_sc    : (TB, F)   online weighted-feature accumulator (f32)
    tb, ts, f = x_ref.shape
    h = w_ref.shape[1]
    si = pl.program_id(1)
    ns = pl.num_programs(1)
    seq_ragged = (seq_len % ts) != 0            # static python bool

    @pl.when(si == 0)
    def _init():
        m_sc[...] = jnp.full_like(m_sc, -jnp.inf)
        l_sc[...] = jnp.zeros_like(l_sc)
        acc_sc[...] = jnp.zeros_like(acc_sc)

    # --- att = tanh(x @ W^T + b): one big-M MXU matmul over all TB*TS rows.
    # NOTE: the reshape is a free view only when TS % 8 == 0 (sublane tiling);
    # the wrapper always picks TS as a multiple of 8 when it tiles the seq.
    x2d = x_ref[...].reshape(tb * ts, f)
    pre = jnp.dot(x2d, w_ref[...], preferred_element_type=jnp.float32) + wb_ref[...]
    att = jnp.tanh(pre.astype(tanh_dtype))                        # (TB*TS, H)

    # --- score = att @ V.weight^T + V.bias: the N=1 matmul is done as a VPU
    # broadcast-multiply + lane reduce (no MXU push/pop for a single column).
    att3 = att.reshape(tb, ts, h)
    score = jnp.sum(att3 * vw_ref[...], axis=-1) + vb_ref[0]      # (TB, TS) f32

    if seq_ragged:
        remaining = seq_len - si * ts                  # valid cols in this tile
        col = lax.broadcasted_iota(jnp.int32, (1, ts), 1)
        score = jnp.where(col < remaining, score, -1e30)

    # --- online softmax over the sequence axis (works for any number of
    # sequence tiles; degenerates cleanly when the whole sequence is one tile).
    m_prev = m_sc[...]
    m_new = jnp.maximum(m_prev, jnp.max(score, axis=-1, keepdims=True))
    alpha = jnp.exp(m_prev - m_new)                               # (TB, 1)
    p = jnp.exp(score - m_new)                                    # (TB, TS)
    l_sc[...] = alpha * l_sc[...] + jnp.sum(p, axis=-1, keepdims=True)
    m_sc[...] = m_new

    # --- weighted feature sum, accumulated over small S-chunks so no
    # (TB, TS, F) f32 temporary (or full f32 copy of x) is ever materialized.
    acc_sc[...] = acc_sc[...] * alpha
    c0 = 0
    while c0 < ts:                                     # static python unroll
        cs = min(chunk, ts - c0)
        xc = x_ref[:, c0:c0 + cs, :]                   # (TB, cs, F) stream dtype
        pc = p[:, c0:c0 + cs]                          # (TB, cs)     f32
        contrib = pc[:, :, None] * xc                  # promotes to f32 per chunk
        if seq_ragged:
            colc = lax.broadcasted_iota(jnp.int32, (1, cs, 1), 1) + c0
            contrib = jnp.where(colc < remaining, contrib, 0.0)
        acc_sc[...] = acc_sc[...] + jnp.sum(contrib, axis=1)      # (TB, F)
        c0 += cs

    @pl.when(si == ns - 1)
    def _finalize():
        l = l_sc[...]
        inv = pl.reciprocal(l, approx=True) if approx_recip else 1.0 / l
        o_ref[...] = (acc_sc[...] * inv).astype(o_ref.dtype)


# --------------------------------------------------------------------------
# Tile-size selection (VMEM accounting includes in-kernel temporaries)
# --------------------------------------------------------------------------
def _round_up(x, m):
    return ((x + m - 1) // m) * m


def _chunk_for(ts):
    # <= 32 unrolled chunk iterations while keeping the per-chunk
    # (TB, chunk, F) f32 temporary small.
    return max(8, 8 * ((ts + 255) // 256))


def _row_bytes(ts, F, H, x_bytes, out_bytes, tanh_bytes):
    chunk = _chunk_for(ts)
    return (2 * ts * F * x_bytes             # double-buffered feature block
            + ts * H * (8 + tanh_bytes)      # f32 pre-act + tanh + score product
            + 3 * ts * 4                     # score / exp temporaries
            + 2 * F * out_bytes              # double-buffered output block
            + F * 4 + 2 * 128 * 4            # acc / m / l scratch
            + chunk * F * 4)                 # per-chunk weighted-sum temporary


def _fixed_bytes(F, H, x_bytes):
    return 2 * (F * H * x_bytes + 4 * H * 4)  # W (double-buffered) + small vecs


def _pick_tiles(B, S, F, H, x_bytes, out_bytes, tanh_bytes, budget):
    row_align = 8 if out_bytes >= 4 else (16 if out_bytes == 2 else 32)
    avail = max(0, budget - _fixed_bytes(F, H, x_bytes))

    def rows_that_fit(ts):
        return avail // max(1, _row_bytes(ts, F, H, x_bytes, out_bytes, tanh_bytes))

    # Sequence tile: whole sequence if a minimal (<=8-row) batch block fits,
    # otherwise the largest multiple-of-8 tile that does (online softmax in
    # scratch stitches the rest of the sequence across grid steps).
    if rows_that_fit(S) >= min(B, 8):
        ts = S
    else:
        ts = 8
        for cand in (2048, 1024, 512, 256, 128, 64, 32, 16):
            if cand < S and rows_that_fit(cand) >= min(B, 8):
                ts = cand
                break
        # TODO(synk): if even an (8, 8, F) block does not fit, F itself would
        # need tiling; not implemented here.
    ts = min(ts, S)

    # Batch tile: as many rows as fit the budget, aligned to the output
    # dtype's sublane packing whenever the batch is actually tiled.
    tb = min(B, max(1, rows_that_fit(ts)))
    if tb < B:
        if tb >= row_align:
            tb = (tb // row_align) * row_align
        elif tb >= 8:
            tb = (tb // 8) * 8
        else:
            tb = min(B, 8)     # 8-row floor for a legal non-full block

    # Prefer an even number of batch grid steps (v7x dual-TC balance);
    # sublane alignment takes priority over the split.
    nb = -(-B // tb)
    if nb == 1 and B >= 2 * row_align:
        cand = _round_up(-(-B // 2), row_align)
        if cand < B:
            tb = cand
    elif nb > 1 and nb % 2 == 1:
        base = -(-B // (nb + 1))
        for cand in (_round_up(base, row_align), (base // row_align) * row_align):
            if 8 <= cand < B and (-(-B // cand)) % 2 == 0:
                tb = cand
                break
    return tb, ts


# --------------------------------------------------------------------------
# Wrapper
# --------------------------------------------------------------------------
def attention_head(features, w_weight, w_bias, v_weight, v_bias, *,
                   batch_tile=None, seq_tile=None, vmem_limit_bytes=None,
                   tanh_dtype=None, approx_reciprocal=True):
    """AttentionHead forward.  features: (B, S, F) -> (B, F) in features.dtype.

    The feature / W matmul stream runs in features.dtype: pass bf16 features
    to halve HBM traffic (recommended on v5e/v6e for large F, H).  No
    wrapper-side cast or padding pass over the (B, S, F) tensor is performed;
    ragged batch / sequence tiles are handled inside the kernel.  Softmax and
    the weighted feature sum always accumulate in f32.  The softmax
    denominator uses the EUP approximate reciprocal by default (~1e-3
    relative error); pass approx_reciprocal=False for an exact divide.
    """
    B, S, F = features.shape
    H = w_weight.shape[0]                       # nn.Linear(F, H): weight (H, F)
    out_dtype = features.dtype
    x_bytes = jnp.dtype(features.dtype).itemsize
    out_bytes = jnp.dtype(out_dtype).itemsize

    if tanh_dtype is None:
        # bf16 tanh on bf16 streams: v6e/v7x have a bf16 EUP (~2x element rate).
        tanh_dtype = jnp.bfloat16 if features.dtype == jnp.bfloat16 else jnp.float32
    tanh_bytes = jnp.dtype(tanh_dtype).itemsize

    # ---- generation-aware VMEM budget.
    try:
        vmem_cap = int(pltpu.get_tpu_info().vmem_capacity_bytes)
    except Exception:
        vmem_cap = 64 * 1024 * 1024             # conservative (v7x per-core)
    if vmem_limit_bytes is None:
        # ~40 MiB on 64 MiB parts (v7x), ~80 MiB on 128 MiB parts (v5e/v6e).
        vmem_limit_bytes = min(int(0.62 * vmem_cap), 96 * 1024 * 1024)
    budget = int(0.75 * vmem_limit_bytes)       # headroom for compiler scratch

    tb, ts = _pick_tiles(B, S, F, H, x_bytes, out_bytes, tanh_bytes, budget)
    if batch_tile is not None:
        tb = min(B, batch_tile)
        if tb < B:
            tb = max(8, (tb // 8) * 8)
    if seq_tile is not None:
        ts = min(S, seq_tile)
        if ts < S:
            ts = max(8, (ts // 8) * 8)

    chunk = _chunk_for(ts)
    nb = -(-B // tb)
    ns = -(-S // ts)

    # Tiny parameter tensors: reshaping / casting these is negligible.
    w_t = w_weight.T.astype(features.dtype)             # (F, H) stream dtype
    wb = w_bias.reshape(1, H).astype(jnp.float32)       # (1, H)
    vw = v_weight.reshape(1, H).astype(jnp.float32)     # (1, H)
    vb = v_bias.reshape(1).astype(jnp.float32)          # (1,) -> SMEM scalar

    kernel = functools.partial(
        _attn_head_kernel, seq_len=S, chunk=chunk,
        tanh_dtype=tanh_dtype, approx_recip=approx_reciprocal)

    # TODO(synk): single-buffer the grid-invariant W block
    # (pipeline_mode=pl.Buffered(1)) once that knob is available on the
    # top-level pallas_call pipeline; reclaims F*H*itemsize of VMEM.
    return pl.pallas_call(
        kernel,
        out_shape=jax.ShapeDtypeStruct((B, F), out_dtype),
        grid_spec=pltpu.PrefetchScalarGridSpec(
            num_scalar_prefetch=0,
            grid=(nb, ns),
            in_specs=[
                pl.BlockSpec((tb, ts, F), lambda b, s: (b, s, 0)),
                pl.BlockSpec((F, H), lambda b, s: (0, 0)),
                pl.BlockSpec((1, H), lambda b, s: (0, 0)),
                pl.BlockSpec((1, H), lambda b, s: (0, 0)),
                pl.BlockSpec(memory_space=pltpu.MemorySpace.SMEM),
            ],
            out_specs=pl.BlockSpec((tb, F), lambda b, s: (b, 0)),
            scratch_shapes=[
                pltpu.VMEM((tb, 1), jnp.float32),    # running max
                pltpu.VMEM((tb, 1), jnp.float32),    # running denominator
                pltpu.VMEM((tb, F), jnp.float32),    # weighted-sum accumulator
            ],
        ),
        compiler_params=pltpu.CompilerParams(
            dimension_semantics=("parallel", "arbitrary"),
            vmem_limit_bytes=vmem_limit_bytes,
        ),
    )(features, w_t, wb, vw, vb)


def attention_head_ref(features, w_weight, w_bias, v_weight, v_bias):
    """Pure-JAX reference mirroring the PyTorch forward."""
    att = jnp.tanh(jnp.einsum("bsf,hf->bsh", features, w_weight) + w_bias)
    score = jnp.einsum("bsh,oh->bso", att, v_weight) + v_bias     # (B, S, 1)
    attn_w = jax.nn.softmax(score, axis=1)
    return jnp.sum(attn_w * features, axis=1)                     # (B, F)


if __name__ == "__main__":
    B, S, F, H = 16, 8, 32, 16

    key = jax.random.PRNGKey(0)
    k_x, k_w, k_wb, k_v, k_vb = jax.random.split(key, 5)

    features = jax.random.normal(k_x, (B, S, F), dtype=jnp.float32)
    # nn.Linear(F, H): weight (H, F), bias (H,)
    w_weight = jax.random.normal(k_w, (H, F), dtype=jnp.float32) * 0.1
    w_bias = jax.random.normal(k_wb, (H,), dtype=jnp.float32) * 0.1
    # nn.Linear(H, 1): weight (1, H), bias (1,)
    v_weight = jax.random.normal(k_v, (1, H), dtype=jnp.float32) * 0.1
    v_bias = jax.random.normal(k_vb, (1,), dtype=jnp.float32) * 0.1

    ref = attention_head_ref(features, w_weight, w_bias, v_weight, v_bias)

    # f32 path.
    out = jax.block_until_ready(
        attention_head(features, w_weight, w_bias, v_weight, v_bias))
    assert out.shape == (B, F)
    assert jnp.allclose(out, ref, atol=5e-3, rtol=5e-3), "f32 path mismatch"

    # bf16 feature stream: the caller passes bf16 features directly, so the
    # kernel's dominant HBM stream is halved without a wrapper-side cast pass.
    f_bf16 = features.astype(jnp.bfloat16)
    out_bf16 = jax.block_until_ready(
        attention_head(f_bf16, w_weight, w_bias, v_weight, v_bias))
    ref_bf16 = attention_head_ref(
        f_bf16.astype(jnp.float32),
        w_weight.astype(jnp.bfloat16).astype(jnp.float32),
        w_bias, v_weight, v_bias)
    assert jnp.allclose(out_bf16.astype(jnp.float32), ref_bf16,
                        atol=4e-2, rtol=4e-2), "bf16 path mismatch"

    # Ragged batch + ragged sequence tiles (no jnp.pad pass): exercises the
    # online-softmax sequence tiling, in-kernel masking of the ragged seq tail
    # and the OOB-dropped final batch block.
    B2, S2 = 10, 12
    feats2 = jax.random.normal(jax.random.PRNGKey(1), (B2, S2, F),
                               dtype=jnp.float32)
    ref2 = attention_head_ref(feats2, w_weight, w_bias, v_weight, v_bias)
    out2 = jax.block_until_ready(
        attention_head(feats2, w_weight, w_bias, v_weight, v_bias,
                       batch_tile=8, seq_tile=8))
    assert out2.shape == (B2, F)
    assert jnp.allclose(out2, ref2, atol=5e-3, rtol=5e-3), "ragged tile mismatch"

    print("KERNEL_OK")
</pallas_src>

<mosaic_0001>
module attributes {stable_mosaic.version = 11 : i64} {
  func.func @_attn_head_kernel(%arg0: i32, %arg1: i32, %arg2: memref<8x8x32xf32, #tpu.memory_space<vmem>>, %arg3: memref<32x16xf32, #tpu.memory_space<vmem>>, %arg4: memref<1x16xf32, #tpu.memory_space<vmem>>, %arg5: memref<1x16xf32, #tpu.memory_space<vmem>>, %arg6: memref<1xf32, #tpu.memory_space<smem>>, %arg7: memref<8x32xf32, #tpu.memory_space<vmem>>, %arg8: memref<8x1xf32, #tpu.memory_space<vmem>>, %arg9: memref<8x1xf32, #tpu.memory_space<vmem>>, %arg10: memref<8x32xf32, #tpu.memory_space<vmem>>) attributes {dimension_semantics = [#tpu.dimension_semantics<parallel>, #tpu.dimension_semantics<arbitrary>], iteration_bounds = array<i64: 2, 1>, scalar_prefetch = 0 : i64, scratch_operands = 3 : i64, tpu.core_type = #tpu.core_type<tc>, window_params = [{transform_indices = @transform_0, window_bounds = array<i64: 8, 8, 32>}, {pipeline_mode = #tpu.pipeline_mode<synchronous>, transform_indices = @transform_1, window_bounds = array<i64: 32, 16>}, {pipeline_mode = #tpu.pipeline_mode<synchronous>, transform_indices = @transform_2, window_bounds = array<i64: 1, 16>}, {pipeline_mode = #tpu.pipeline_mode<synchronous>, transform_indices = @transform_3, window_bounds = array<i64: 1, 16>}, {transform_indices = @transform_4, window_bounds = array<i64: 1>}, {transform_indices = @transform_5, window_bounds = array<i64: 8, 32>}]} {
    %c0_i32 = arith.constant 0 : i32
    %0 = arith.cmpi eq, %arg1, %c0_i32 : i32
    %1 = arith.extui %0 : i1 to i32
    %c0_i32_0 = arith.constant 0 : i32
    %2 = arith.cmpi ne, %1, %c0_i32_0 : i32
    scf.if %2 {
      %cst_35 = arith.constant 0xFF800000 : f32
      %51 = vector.broadcast %cst_35 : f32 to vector<8x1xf32>
      %c0_36 = arith.constant 0 : index
      %c0_37 = arith.constant 0 : index
      %52 = vector.load %arg8[%c0_36, %c0_37] : memref<8x1xf32, #tpu.memory_space<vmem>>, vector<8x1xf32>
      tpu.vector_store %arg8[%c0_36, %c0_37], %51 {strides = array<i32>} : memref<8x1xf32, #tpu.memory_space<vmem>>, vector<8x1xf32>,
      %cst_38 = arith.constant 0.000000e+00 : f32
      %53 = vector.broadcast %cst_38 : f32 to vector<8x1xf32>
      %c0_39 = arith.constant 0 : index
      %c0_40 = arith.constant 0 : index
      %54 = vector.load %arg9[%c0_39, %c0_40] : memref<8x1xf32, #tpu.memory_space<vmem>>, vector<8x1xf32>
      tpu.vector_store %arg9[%c0_39, %c0_40], %53 {strides = array<i32>} : memref<8x1xf32, #tpu.memory_space<vmem>>, vector<8x1xf32>,
      %cst_41 = arith.constant 0.000000e+00 : f32
      %55 = vector.broadcast %cst_41 : f32 to vector<8x32xf32>
      %c0_42 = arith.constant 0 : index
      %c0_43 = arith.constant 0 : index
      %56 = vector.load %arg10[%c0_42, %c0_43] : memref<8x32xf32, #tpu.memory_space<vmem>>, vector<8x32xf32>
      tpu.vector_store %arg10[%c0_42, %c0_43], %55 {strides = array<i32>} : memref<8x32xf32, #tpu.memory_space<vmem>>, vector<8x32xf32>,
    } else {
    }
    %c0 = arith.constant 0 : index
    %c0_1 = arith.constant 0 : index
    %c0_2 = arith.constant 0 : index
    %3 = vector.load %arg2[%c0, %c0_1, %c0_2] : memref<8x8x32xf32, #tpu.memory_space<vmem>>, vector<8x8x32xf32>
    %4 = vector.shape_cast %3 : vector<8x8x32xf32> to vector<64x32xf32>
    %c0_3 = arith.constant 0 : index
    %c0_4 = arith.constant 0 : index
    %5 = vector.load %arg3[%c0_3, %c0_4] : memref<32x16xf32, #tpu.memory_space<vmem>>, vector<32x16xf32>
    %cst = arith.constant dense<0.000000e+00> : vector<64x16xf32>
    %6 = tpu.matmul %4, %5, %cst {dimension_numbers = #tpu.dot_dimension_numbers<[1], [0], [0], [1], [0, 0, 1, 1], [], []>} : vector<64x32xf32>, vector<32x16xf32>, vector<64x16xf32> -> vector<64x16xf32>
    %c0_5 = arith.constant 0 : index
    %c0_6 = arith.constant 0 : index
    %7 = vector.load %arg4[%c0_5, %c0_6] : memref<1x16xf32, #tpu.memory_space<vmem>>, vector<1x16xf32>
    %8 = vector.broadcast %7 : vector<1x16xf32> to vector<64x16xf32>
    %9 = arith.addf %6, %8 : vector<64x16xf32>
    %10 = math.tanh %9 : vector<64x16xf32>
    %11 = vector.shape_cast %10 : vector<64x16xf32> to vector<8x8x16xf32>
    %c0_7 = arith.constant 0 : index
    %c0_8 = arith.constant 0 : index
    %12 = vector.load %arg5[%c0_7, %c0_8] : memref<1x16xf32, #tpu.memory_space<vmem>>, vector<1x16xf32>
    %13 = vector.shape_cast %12 : vector<1x16xf32> to vector<1x1x16xf32>
    %14 = vector.broadcast %13 : vector<1x1x16xf32> to vector<8x8x16xf32>
    %15 = arith.mulf %11, %14 : vector<8x8x16xf32>
    %cst_9 = arith.constant dense<0.000000e+00> : vector<8x8xf32>
    %16 = vector.multi_reduction <add>, %15, %cst_9 [2] : vector<8x8x16xf32> to vector<8x8xf32>
    %c0_10 = arith.constant 0 : index
    %17 = memref.load %arg6[%c0_10] : memref<1xf32, #tpu.memory_space<smem>>
    %18 = vector.broadcast %17 : f32 to vector<8x8xf32>
    %19 = arith.addf %16, %18 : vector<8x8xf32>
    %c0_11 = arith.constant 0 : index
    %c0_12 = arith.constant 0 : index
    %20 = vector.load %arg8[%c0_11, %c0_12] : memref<8x1xf32, #tpu.memory_space<vmem>>, vector<8x1xf32>
    %cst_13 = arith.constant dense<0xFF800000> : vector<8xf32>
    %21 = vector.multi_reduction <maximumf>, %19, %cst_13 [1] : vector<8x8xf32> to vector<8xf32>
    %22 = vector.shape_cast %21 : vector<8xf32> to vector<8x1xf32>
    %23 = arith.maximumf %20, %22 : vector<8x1xf32>
    %24 = arith.subf %20, %23 : vector<8x1xf32>
    %25 = math.exp %24 : vector<8x1xf32>
    %26 = vector.broadcast %23 : vector<8x1xf32> to vector<8x8xf32>
    %27 = arith.subf %19, %26 : vector<8x8xf32>
    %28 = math.exp %27 : vector<8x8xf32>
    %c0_14 = arith.constant 0 : index
    %c0_15 = arith.constant 0 : index
    %29 = vector.load %arg9[%c0_14, %c0_15] : memref<8x1xf32, #tpu.memory_space<vmem>>, vector<8x1xf32>
    %30 = arith.mulf %25, %29 : vector<8x1xf32>
    %cst_16 = arith.constant dense<0.000000e+00> : vector<8xf32>
    %31 = vector.multi_reduction <add>, %28, %cst_16 [1] : vector<8x8xf32> to vector<8xf32>
    %32 = vector.shape_cast %31 : vector<8xf32> to vector<8x1xf32>
    %33 = arith.addf %30, %32 : vector<8x1xf32>
    %c0_17 = arith.constant 0 : index
    %c0_18 = arith.constant 0 : index
    %34 = vector.load %arg9[%c0_17, %c0_18] : memref<8x1xf32, #tpu.memory_space<vmem>>, vector<8x1xf32>
    tpu.vector_store %arg9[%c0_17, %c0_18], %33 {strides = array<i32>} : memref<8x1xf32, #tpu.memory_space<vmem>>, vector<8x1xf32>,
    %c0_19 = arith.constant 0 : index
    %c0_20 = arith.constant 0 : index
    %35 = vector.load %arg8[%c0_19, %c0_20] : memref<8x1xf32, #tpu.memory_space<vmem>>, vector<8x1xf32>
    tpu.vector_store %arg8[%c0_19, %c0_20], %23 {strides = array<i32>} : memref<8x1xf32, #tpu.memory_space<vmem>>, vector<8x1xf32>,
    %c0_21 = arith.constant 0 : index
    %c0_22 = arith.constant 0 : index
    %36 = vector.load %arg10[%c0_21, %c0_22] : memref<8x32xf32, #tpu.memory_space<vmem>>, vector<8x32xf32>
    %37 = vector.broadcast %25 : vector<8x1xf32> to vector<8x32xf32>
    %38 = arith.mulf %36, %37 : vector<8x32xf32>
    %c0_23 = arith.constant 0 : index
    %c0_24 = arith.constant 0 : index
    %39 = vector.load %arg10[%c0_23, %c0_24] : memref<8x32xf32, #tpu.memory_space<vmem>>, vector<8x32xf32>
    tpu.vector_store %arg10[%c0_23, %c0_24], %38 {strides = array<i32>} : memref<8x32xf32, #tpu.memory_space<vmem>>, vector<8x32xf32>,
    %c0_25 = arith.constant 0 : index
    %c0_26 = arith.constant 0 : index
    %c0_27 = arith.constant 0 : index
    %40 = vector.load %arg2[%c0_25, %c0_26, %c0_27] : memref<8x8x32xf32, #tpu.memory_space<vmem>>, vector<8x8x32xf32>
    %41 = vector.shape_cast %28 : vector<8x8xf32> to vector<8x8x1xf32>
    %42 = vector.broadcast %41 : vector<8x8x1xf32> to vector<8x8x32xf32>
    %43 = arith.mulf %42, %40 : vector<8x8x32xf32>
    %c0_28 = arith.constant 0 : index
    %c0_29 = arith.constant 0 : index
    %44 = vector.load %arg10[%c0_28, %c0_29] : memref<8x32xf32, #tpu.memory_space<vmem>>, vector<8x32xf32>
    %cst_30 = arith.constant dense<0.000000e+00> : vector<8x32xf32>
    %45 = vector.multi_reduction <add>, %43, %cst_30 [1] : vector<8x8x32xf32> to vector<8x32xf32>
    %46 = arith.addf %44, %45 : vector<8x32xf32>
    %c0_31 = arith.constant 0 : index
    %c0_32 = arith.constant 0 : index
    %47 = vector.load %arg10[%c0_31, %c0_32] : memref<8x32xf32, #tpu.memory_space<vmem>>, vector<8x32xf32>
    tpu.vector_store %arg10[%c0_31, %c0_32], %46 {strides = array<i32>} : memref<8x32xf32, #tpu.memory_space<vmem>>, vector<8x32xf32>,
    %c0_i32_33 = arith.constant 0 : i32
    %48 = arith.cmpi eq, %arg1, %c0_i32_33 : i32
    %49 = arith.extui %48 : i1 to i32
    %c0_i32_34 = arith.constant 0 : i32
    %50 = arith.cmpi ne, %49, %c0_i32_34 : i32
    scf.if %50 {
      %c0_35 = arith.constant 0 : index
      %c0_36 = arith.constant 0 : index
      %51 = vector.load %arg9[%c0_35, %c0_36] : memref<8x1xf32, #tpu.memory_space<vmem>>, vector<8x1xf32>
      %52 = tpu.reciprocal %51 {approx = true} : vector<8x1xf32> -> vector<8x1xf32>
      %c0_37 = arith.constant 0 : index
      %c0_38 = arith.constant 0 : index
      %53 = vector.load %arg10[%c0_37, %c0_38] : memref<8x32xf32, #tpu.memory_space<vmem>>, vector<8x32xf32>
      %54 = vector.broadcast %52 : vector<8x1xf32> to vector<8x32xf32>
      %55 = arith.mulf %53, %54 : vector<8x32xf32>
      %c0_39 = arith.constant 0 : index
      %c0_40 = arith.constant 0 : index
      %56 = vector.load %arg7[%c0_39, %c0_40] : memref<8x32xf32, #tpu.memory_space<vmem>>, vector<8x32xf32>
      tpu.vector_store %arg7[%c0_39, %c0_40], %55 {strides = array<i32>} : memref<8x32xf32, #tpu.memory_space<vmem>>, vector<8x32xf32>,
    } else {
    }
    return
  }
  func.func @transform_0(%arg0: i32, %arg1: i32) -> (i32, i32, i32) {
    %c0_i32 = arith.constant 0 : i32
    %c0_i32_0 = arith.constant 0 : i32
    return %arg0, %arg1, %c0_i32 : i32, i32, i32
  }
  func.func @transform_1(%arg0: i32, %arg1: i32) -> (i32, i32) {
    %c0_i32 = arith.constant 0 : i32
    %c0_i32_0 = arith.constant 0 : i32
    %c0_i32_1 = arith.constant 0 : i32
    return %c0_i32, %c0_i32_0 : i32, i32
  }
  func.func @transform_2(%arg0: i32, %arg1: i32) -> (i32, i32) {
    %c0_i32 = arith.constant 0 : i32
    %c0_i32_0 = arith.constant 0 : i32
    %c0_i32_1 = arith.constant 0 : i32
    return %c0_i32, %c0_i32_0 : i32, i32
  }
  func.func @transform_3(%arg0: i32, %arg1: i32) -> (i32, i32) {
    %c0_i32 = arith.constant 0 : i32
    %c0_i32_0 = arith.constant 0 : i32
    %c0_i32_1 = arith.constant 0 : i32
    return %c0_i32, %c0_i32_0 : i32, i32
  }
  func.func @transform_4(%arg0: i32, %arg1: i32) -> i32 {
    %c0_i32 = arith.constant 0 : i32
    %c0_i32_0 = arith.constant 0 : i32
    return %c0_i32 : i32
  }
  func.func @transform_5(%arg0: i32, %arg1: i32) -> (i32, i32) {
    %c0_i32 = arith.constant 0 : i32
    %c0_i32_0 = arith.constant 0 : i32
    return %arg0, %c0_i32 : i32, i32
  }
}

</mosaic_0001>

<bundles_post_ra>
// kernel: tpu_custom_call.1
= control target key start
LH: loop header
LB: loop body
LE: loop exit
PB: predicated region body
PF: predicated region fallthrough
CT: control target
= control target key end

     0   :  { %s1538_s0 = inlined_call_operand.hbm [shape: f32[16,8,32], index: 0, kind: input, shape index: {}]   ;;  %s1539_s1 = inlined_call_operand.vmem [shape: f32[32,16], index: 1, kind: input, shape index: {}]   ;;  %s1540_s2 = inlined_call_operand.vmem [shape: f32[1,16], index: 2, kind: input, shape index: {}]   ;;  %s1541_s3 = inlined_call_operand.vmem [shape: f32[1,16], index: 3, kind: input, shape index: {}]   ;;  %s1542_s4 = inlined_call_operand.<no memory space> [shape: f32[1], index: 4, kind: input, shape index: {}]   ;;  %s1543_s5 = inlined_call_operand.hbm [shape: f32[16,32], index: 5, kind: output, shape index: {}]  }
   0x1   :  { %10 = sst [smem:[#allocation5]] %s1542_s4 }
   0x2   :  { %11 = vsyncpa [#allocation7], 0 }
   0x3   :  { %13 = vsyncpa [#allocation7 + $0x1], 0 }
   0x4   :  { %14 = vsyncpa [#allocation8], 0 }
   0x5   :  { %16 = vsyncpa [#allocation8 + $0x1], 0  ;;  %s1225_s20 = smov 0   ;;  %s1227_s21 = smov 0  }
   0x6   :  { %s1229_s22 = smov 0   ;;  %s1231_s23 = smov 0  }
   0x7   :  { %s1233_s24 = smov 0   ;;  %s1235_s25 = smov 0  }
   0x8 LB: > { %s905_s4 = sadd.s32 4294967295, %s1183_s25   ;;  %s906_s26 = sadd.s32 4294967294, %s1183_s25   ;;  %s1183_s25 = sphi %s1235_s25, %s22_s25   ;;  %s1179_s24 = sphi %s1233_s24, %s1554_s24   ;;  %s1175_s23 = sphi %s1231_s23, %s1553_s23   ;;  %s1171_s22 = sphi %s1229_s22, %s1552_s22   ;;  %s1167_s21 = sphi %s1227_s21, %s1551_s21   ;;  %s1163_s20 = sphi %s1225_s20, %s1550_s20  }
   0x9   : > { %s34_s27 = sadd.s32 1, %s1179_s24  ;;  %s43_s28 = sadd.s32 1, %s1171_s22 }
   0xa   : > { %p36_p0 = scmp.ge.s32.totalorder %s34_s27, 2  ;;  %p50_p1 = scmp.ne.s32.totalorder %s1171_s22, %s1167_s21 }
   0xb   : > { %p51_p2 = scmp.eq.s32.totalorder %s1183_s25, 0  ;;  %p56_p3 = scmp.ne.s32.totalorder %s1167_s21, %s1163_s20 }
   0xc   : > { %s1556_s27 = smov (%p36_p0, %s34_s27), 0  ;;  %p57_p5 = scmp.eq.s32.totalorder %s905_s4, 0 }
   0xd   : > { %p1266_p4 = por %p51_p2, %p50_p1  ;;  %s38_s30 = ssub.s32 %s1179_s24, %s1556_s27 }
   0xe   : > { %p164_p6 = scmp.eq.s32.totalorder %s905_s4, 1  ;;  %p41_p7 = scmp.eq.s32.totalorder %s38_s30, 0 }
   0xf   : > { %p1272_p8 = por %p57_p5, %p56_p3  ;;  %p170_p10 = scmp.eq.s32.totalorder %s906_s26, 1 }
  0x10   : > { %p1276_p9 = por %p164_p6, %p50_p1  ;;  %p982_p13 = scmp.lt.s32.totalorder %s1183_s25, 2 }
  0x11   : > { %s1281_s8 = scalar_select %p41_p7, %s1171_s22, %s43_s28  }
  0x12   : > { %p1283_p11 = por %p170_p10, %p56_p3  ;;  %s202_s10 = sand.u32 1, %s1171_s22  }
  0x13   : > { %s909_s11 = sshll.u32 %s202_s10, 6  ;;  %s929_s12 = sshll.u32 %s1179_s24, 10 }
  0x14   : > { %s213_s15 = scalar_lea.hbm %s1538_s0, %s929_s12  ;;  %s206_s16 = scalar_lea.vmem [#allocation6], %s909_s11 }
  0x15   : > { %s214_s17 = sshll.u32 %s206_s16, 4  ;;  %p1296_p0 = pnand %p982_p13, %p1266_p4  ;;  %s215_s17 = int_to_ptr.vmem [resolvable:$true] %s214_s17 }
  0x16   : > { %p912_p1 = scmp.ge.s32.totalorder %s1183_s25, 1  ;;  %s203_s19 = scalar_lea.sflag [#allocation7], %s202_s10 }
  0x17   : > { %p1077_p2 = pneg %p1296_p0  ;;  %s1088_s4 = scalar_lea.vmem %s215_s17, 1024 }
  0x18   : > { %p1089_p3 = scmp.ne.s32.totalorder %s215_s17, %s1088_s4  ;;  %s1185_s26 = smov [#allocation6]  }
  0x19   : > { %s1093_s28 = sshll.u32 %s1185_s26, 4  ;;  %s1094_s28 = int_to_ptr.vmem [resolvable:$false] %s1093_s28 }
  0x1a   : > { %p1091_p5 = pnand %p1089_p3, %p1077_p2  ;;  %s1095_s30 = scalar_lea.vmem %s1094_s28, 2048 }
  0x1b   : > { %p1096_p7 = scmp.lt.s32.totalorder %s215_s17, %s1094_s28  ;;  %p1097_p10 = scmp.lt.s32.totalorder %s1095_s30, %s1088_s4 }
  0x1c   : > { %p1092_p6 = pneg %p1091_p5 }
  0x1d   : > { %p1098_p12 = por %p1097_p10, %p1096_p7 }
  0x1f   : > { %p1099_p4 = pnand %p1098_p12, %p1092_p6 }
  0x21   : > { %1102 = shalt.err (!%p1099_p4)
}
  0x22   : > { %s1186_s29 = smov 128   ;;  %s1187_s10 = smov 8  }
  0x23   : > { %977 = dma.hbm_to_vmem [thread:$0]  (!%p1296_p0), %s213_s15, 1024, %s215_s17, %s203_s19, %s1186_s29, %s1186_s29, %s1187_s10  }
  0x24   : > { %p222_p13 = scmp.lt.s32.totalorder %s1183_s25, 3 }
  0x26   : > { %p223_p2 = pnand %p912_p1, %p222_p13 }
  0x27   : > { %s1309_s11 = sand.u32 (!%p223_p2), 1, %s1167_s21  }
  0x28   : > { %226 = sbr.rel (%p223_p2) target bundleno = 1165 (0x48d), region = 40  ;;  %s913_s12 = sshll.u32 (!%p223_p2), %s1309_s11, 6 }
  0x29   : > { %s229_s13 = scalar_lea.sflag (!%p223_p2), [#allocation7], %s1309_s11  ;;  %s1313_s14 = scalar_lea.vmem (!%p223_p2), [#allocation6], %s913_s12 }
  0x2d   : > { %1154 = dma.done.wait (%p1272_p8), %s229_s13, 1024  }
  0x2e   : > { %1156 = vsyncadd (%p1272_p8), %s229_s13, 4294966272  ;;  %vm267_vm0 = vcmask 261120   ;;  %v280_v0 = vld [vmem:[%s1539_s1 + $0x18] sm:$0xff]  ;;  %v279_v1 = vld [vmem:[%s1539_s1 + $0x10] sm:$0xff]  ;;  %vm441_vm1 = vcmask 130048   ;;  %vm264_vm2 = vcmask 7168   ;;  %v485_v55 = vlaneseq }
  0x2f   : > { %942 = vmatprep.subr.mxu0 %v280_v0  ;;  %962 = vmatprep.subr.mxu1 %v280_v0  ;;  %v1326_v2 = vld [vmem:[%s1313_s14] sm:$0xff]  ;;  %v278_v3 = vld [vmem:[%s1539_s1 + $0x8] sm:$0xff]  ;;  %v277_v4 = vld [vmem:[%s1539_s1] sm:$0xff]  ;;  %v1188_v54 = vmov -inf   ;;  %s466_s12 = sld [smem:[#allocation5]]  ;;  %vm519_vm3 = vcmask 1041409  }
  0x30   : > { %943 = vmatpush3.msra.mxu0 %v280_v0  ;;  %950 = vmatprep.mubr.msk.f32.mxu0 %vm267_vm0, %v1326_v2  ;;  %v1337_v5 = vld [vmem:[%s1313_s14 + $0x8] sm:$0xff]  ;;  %v1340_v6 = vld [vmem:[%s1313_s14 + $0x10] sm:$0xff]  ;;  %v1343_v7 = vld [vmem:[%s1313_s14 + $0x20] sm:$0xff]  ;;  %265 = vst.msk [vmem:[#allocation2] sm:$0xff] %vm264_vm2, %v1188_v54  ;;  %v486_v57 = vand.u32 127, %v485_v55  ;;  %v1386_v58 = vshrl.u32 %v485_v55, 7 }
  0x31   : > { %944 = vmatprep.subr.mxu0 %v279_v1  ;;  %966 = vmatpush3.msra.mxu1 %v280_v0  ;;  %v1346_v8 = vld [vmem:[%s1313_s14 + $0x28] sm:$0xff]  ;;  %v1351_v9 = vld [vmem:[%s1313_s14 + $0x30] sm:$0xff]  ;;  %v1356_v10 = vld [vmem:[%s1313_s14 + $0x18] sm:$0xff]  ;;  %vm521_vm4 = vcmask 1042434   ;;  %vm523_vm5 = vcmask 1043459   ;;  %vm525_vm6 = vcmask 1044484  }
  0x32   : > { %945 = vmatpush3.msra.mxu0 %v279_v1  ;;  %963 = vmatprep.subr.mxu1 %v279_v1  ;;  %v1365_v11 = vld [vmem:[%s1313_s14 + $0x38] sm:$0xff]  ;;  %v915_v12 = vld [vmem:[%s1540_s2] ss:$0 sm:$0xff]  ;;  %v1391_v63 = vsub.s32 %v486_v57, %v1386_v58  ;;  %vm527_vm7 = vcmask 1045509   ;;  %vm529_vm8 = vcmask 1046534   ;;  %vm531_vm9 = vcmask 1047559  }
  0x33   : > { %946 = vmatprep.subr.mxu0 %v278_v3  ;;  %967 = vmatpush3.msra.mxu1 %v279_v1  ;;  %v924_v29 = vld [vmem:[%s1541_s3] ss:$0 sm:$0xff]  ;;  %vm534_vm10 = vcmask 64512   ;;  %s914_s13 = sshll.u32 %s1309_s11, 3  ;;  %s926_s14 = sshll.u32 %s1175_s23, 7 }
  0x34   : > { %947 = vmatpush3.msra.mxu0 %v278_v3  ;;  %964 = vmatprep.subr.mxu1 %v278_v3  ;;  %s258_s15 = scalar_lea.vmem [#allocation9], %s914_s13  ;;  %s823_s19 = scalar_lea.hbm %s1543_s5, %s926_s14 }
  0x35   : > { %948 = vmatprep.subr.mxu0 %v277_v4  ;;  %968 = vmatpush3.msra.mxu1 %v278_v3  ;;  %v467_v59 = vstv %s466_s12  ;;  %s825_s16 = sshll.u32 %s258_s15, 4  ;;  %s812_s6 = scalar_lea.sflag [#allocation8], %s1309_s11  ;;  %s826_s16 = int_to_ptr.vmem [resolvable:$true] %s825_s16 }
  0x36   : > { %949 = vmatpush3.msra.mxu0 %v277_v4  ;;  %965 = vmatprep.subr.mxu1 %v277_v4  ;;  %s1103_s4 = scalar_lea.vmem %s826_s16, 128  ;;  %s1191_s26 = smov [#allocation9]  }
  0x37   : > { %951 = vmatmul.mubr.msk.f32.vlgmr.msra.gmra.mxu0 %vm267_vm0, %v1337_v5  ;;  %969 = vmatpush3.msra.mxu1 %v277_v4  ;;  %p1104_p8 = scmp.ne.s32.totalorder %s826_s16, %s1103_s4  ;;  %s1107_s23 = sshll.u32 %s1191_s26, 4  ;;  %s1108_s23 = int_to_ptr.vmem [resolvable:$false] %s1107_s23 }
  0x38   : > { %953 = vmatprep.mubr.msk.f32.mxu0 %vm267_vm0, %v1340_v6  ;;  %956 = vmatprep.mubr.msk.f32.mxu1 %vm267_vm0, %v1343_v7  ;;  %s1109_s28 = scalar_lea.vmem %s1108_s23, 256  ;;  %p1110_p1 = scmp.lt.s32.totalorder %s826_s16, %s1108_s23 }
  0x39   : > { %957 = vmatmul.mubr.msk.f32.vlgmr.msra.gmra.mxu1 %vm267_vm0, %v1346_v8  ;;  %p1105_p12 = pnand %p1104_p8, %p1276_p9  ;;  %p1111_p3 = scmp.lt.s32.totalorder %s1109_s28, %s1103_s4 }
  0x3a   : > { %959 = vmatprep.mubr.msk.f32.mxu1 %vm267_vm0, %v1351_v9 }
  0x3b   : > { %954 = vmatmul.mubr.msk.f32.gmra.mxu0 %vm267_vm0, %v1356_v10  ;;  %p1106_p0 = pneg %p1105_p12  ;;  %p1112_p5 = por %p1111_p3, %p1110_p1 }
  0x3d   : > { %960 = vmatmul.mubr.msk.f32.gmra.mxu1 %vm267_vm0, %v1365_v11  ;;  %p1113_p6 = pnand %p1112_p5, %p1106_p0 }
  0xf7   : > { %v952_v13 = vpop.f32.mrf.mxu0 }
  0xf8   : > { %v385_v14 = vadd.f32 %v952_v13, %v915_v12 }
  0xf9   : > { %v379_v15 = vpop.f32.mrf.mxu0  ;;  %v958_v16 = vpop.f32.mrf.mxu1 }
  0xfa   : > { %1039 = vtanh.f32 %v385_v14  ;;  %v380_v17 = vadd.f32 %v915_v12, %v379_v15  ;;  %v405_v23 = vadd.f32 %v958_v16, %v915_v12 }
  0xfb   : > { %v955_v18 = vpop.f32.mrf.mxu0  ;;  %v399_v19 = vpop.f32.mrf.mxu1 }
  0xfc   : > { %1041 = vtanh.f32 %v380_v17  ;;  %v395_v20 = vadd.f32 %v955_v18, %v915_v12  ;;  %v400_v21 = vadd.f32 %v915_v12, %v399_v19 }
  0xfd   : > { %v389_v22 = vpop.f32.mrf.mxu0  ;;  %v961_v24 = vpop.f32.mrf.mxu1 }
  0xfe   : > { %1043 = vtanh.f32 %v395_v20  ;;  %v390_v25 = vadd.f32 %v915_v12, %v389_v22  ;;  %v415_v28 = vadd.f32 %v961_v24, %v915_v12 }
  0xff   : > { %1045 = vtanh.f32 %v400_v21  ;;  %v409_v26 = vpop.f32.mrf.mxu1 }
 0x100   : > { %1047 = vtanh.f32 %v390_v25  ;;  %v410_v27 = vadd.f32 %v915_v12, %v409_v26 }
 0x101   : > { %1049 = vtanh.f32 %v405_v23 }
 0x102   : > { %1051 = vtanh.f32 %v410_v27 }
 0x103   : > { %1053 = vtanh.f32 %v415_v28 }
 0x107   : > { %v1040_v30 = vpop.eup %1039 }
 0x108   : > { %v434_v31 = vmul.f32 %v1040_v30, %v924_v29 }
 0x109   : > { %v1042_v32 = vpop.eup %1041 }
 0x10a   : > { %v445_v33 = vsel %vm441_vm1, %v434_v31, 0.0  ;;  %v433_v34 = vmul.f32 %v1042_v32, %v924_v29 }
 0x10b   : > { %v1044_v35 = vpop.eup %1043  ;;  %446 = vadd.xlane.f32.xlu0 %v445_v33 }
 0x10c   : > { %v1046_v36 = vpop.eup %1045  ;;  %v436_v37 = vmul.f32 %v1044_v35, %v924_v29  ;;  %v442_v42 = vsel %vm441_vm1, %v433_v34, 0.0 }
 0x10d   : > { %v1048_v38 = vpop.eup %1047  ;;  %v437_v39 = vmul.f32 %v1046_v36, %v924_v29  ;;  %v1189_v36 = vmov 0  }
 0x10e   : > { %v1050_v40 = vpop.eup %1049  ;;  %v451_v41 = vsel %vm441_vm1, %v436_v37, 0.0  ;;  %v435_v43 = vmul.f32 %v1048_v38, %v924_v29  ;;  %1037 = vset.pattern.permute.xlu1 %v1189_v36  ;;  %1038 = vset.pattern.permute.xlu0 %v1189_v36  ;;  %v1190_v37 = vmov 0.0   ;;  %v476_v38 = vld [vmem:[#allocation2] sm:$0xff] }
 0x10f   : > { %v1052_v44 = vpop.eup %1051  ;;  %452 = vadd.xlane.f32.xlu1 %v451_v41  ;;  %443 = vadd.xlane.f32.xlu0 %v442_v42  ;;  %v454_v45 = vsel %vm441_vm1, %v437_v39, 0.0  ;;  %v438_v48 = vmul.f32 %v1050_v40, %v924_v29  ;;  %268 = vst.msk [vmem:[#allocation4] sm:$0xff] %vm267_vm0, %v1190_v37  ;;  %v548_v42 = vsub.s32 0, %v1386_v58 }
 0x110   : > { %v439_v46 = vmul.f32 %v1052_v44, %v924_v29  ;;  %v448_v47 = vsel %vm441_vm1, %v435_v43, 0.0  ;;  %v1054_v49 = vpop.eup %1053  ;;  %266 = vst.msk [vmem:[#allocation3] sm:$0xff] %vm264_vm2, %v1190_v37  ;;  %v552_v43 = vsub.s32 1, %v1386_v58  ;;  %v556_v44 = vsub.s32 2, %v1386_v58 }
 0x111   : > { %v457_v51 = vsel %vm441_vm1, %v438_v48, 0.0  ;;  %v440_v52 = vmul.f32 %v1054_v49, %v924_v29 }
 0x112   : > { %v460_v50 = vsel %vm441_vm1, %v439_v46, 0.0 }
 0x113   : > { %449 = vadd.xlane.f32.xlu1 %v448_v47  ;;  %455 = vadd.xlane.f32.xlu0 %v454_v45  ;;  %v463_v53 = vsel %vm441_vm1, %v440_v52, 0.0  ;;  %v560_v45 = vsub.s32 3, %v1386_v58  ;;  %v564_v52 = vsub.s32 4, %v1386_v58 }
 0x117   : > { %458 = vadd.xlane.f32.xlu1 %v457_v51  ;;  %461 = vadd.xlane.f32.xlu0 %v460_v50 }
 0x11b   : > { %464 = vadd.xlane.f32.xlu1 %v463_v53 }
 0x194   : > { %v447_v56 = vpop.xlane.xlu0 %446 }
 0x195   : > { %v1393_v0 = vadd.f32 %v467_v59, %v447_v56 }
 0x197   : > { %v494_v15 = vrot.slane %v1393_v0, %v1391_v63 }
 0x198   : > { %v453_v60 = vpop.xlane.xlu1 %452  ;;  %v444_v61 = vpop.xlane.xlu0 %443 }
 0x199   : > { %v1388_v62 = vadd.f32 %v467_v59, %v444_v61  ;;  %v1395_v1 = vadd.f32 %v467_v59, %v453_v60 }
 0x19b   : > { %v490_v3 = vrot.slane %v1388_v62, %v1391_v63  ;;  %v502_v18 = vrot.slane %v1395_v1, %v1391_v63 }
 0x19c   : > { %v450_v4 = vpop.xlane.xlu1 %449  ;;  %v456_v12 = vpop.xlane.xlu0 %455 }
 0x19d   : > { %v1399_v13 = vadd.f32 %v467_v59, %v450_v4  ;;  %v1401_v14 = vadd.f32 %v467_v59, %v456_v12  ;;  %v520_v19 = vsel %vm519_vm3, %v494_v15, %v490_v3 }
 0x19f   : > { %v498_v16 = vrot.slane %v1399_v13, %v1391_v63  ;;  %v506_v17 = vrot.slane %v1401_v14, %v1391_v63 }
 0x1a0   : > { %v459_v20 = vpop.xlane.xlu1 %458  ;;  %v462_v21 = vpop.xlane.xlu0 %461 }
 0x1a1   : > { %v522_v22 = vsel %vm521_vm4, %v498_v16, %v520_v19  ;;  %v1413_v23 = vadd.f32 %v467_v59, %v459_v20  ;;  %v1415_v24 = vadd.f32 %v467_v59, %v462_v21 }
 0x1a2   : > { %v524_v25 = vsel %vm523_vm5, %v502_v18, %v522_v22 }
 0x1a3   : > { %v526_v26 = vsel %vm525_vm6, %v506_v17, %v524_v25  ;;  %v510_v27 = vrot.slane %v1413_v23, %v1391_v63  ;;  %v514_v28 = vrot.slane %v1415_v24, %v1391_v63 }
 0x1a4   : > { %v465_v29 = vpop.xlane.xlu1 %464 }
 0x1a5   : > { %v1423_v30 = vadd.f32 %v467_v59, %v465_v29  ;;  %v528_v31 = vsel %vm527_vm7, %v510_v27, %v526_v26  ;;  %v568_v59 = vsub.s32 5, %v1386_v58 }
 0x1a6   : > { %v530_v33 = vsel %vm529_vm8, %v514_v28, %v528_v31 }
 0x1a7   : > { %v518_v32 = vrot.slane %v1423_v30, %v1391_v63 }
 0x1a9   : > { %v532_v34 = vsel %vm531_vm9, %v518_v32, %v530_v33  ;;  %v691_v33 = vld [vmem:[#allocation4] sm:$0xff] }
 0x1aa   : > { %v535_v35 = vsel %vm534_vm10, %v532_v34, -inf }
 0x1ab   : > { %536 = vmax.xlane.f32.xlu0 %v535_v35 }
 0x234   : > { %v537_v39 = vpop.xlane.xlu0 %536 }
 0x235   : > { %v538_v40 = vmax.f32 %v476_v38, %v537_v39 }
 0x237   : > { %v539_v41 = vsub.f32 %v476_v38, %v538_v40  ;;  %690 = vst.msk [vmem:[#allocation2] sm:$0xff] %vm264_vm2, %v538_v40  ;;  %544 = vperm.xlu1 %1037, %v538_v40  }
 0x239   : > { %v540_v57 = vmul.f32 1.442695, %v539_v41 }
 0x2b2   : > { %v545_v46 = vpop.permute.xlu1 %544 }
 0x2b3   : > { %v549_v47 = vrot.slane %v545_v46, %v548_v42  ;;  %v553_v48 = vrot.slane %v545_v46, %v552_v43  ;;  %v557_v49 = vrot.slane %v545_v46, %v556_v44  ;;  %v561_v53 = vrot.slane %v545_v46, %v560_v45 }
 0x2b4   : > { %v565_v60 = vrot.slane %v545_v46, %v564_v52 }
 0x2b5   : > { %v586_v50 = vsub.f32 %v1388_v62, %v549_v47  ;;  %v587_v51 = vsub.f32 %v1393_v0, %v553_v48  ;;  %v588_v54 = vsub.f32 %v1399_v13, %v557_v49  ;;  %v589_v61 = vsub.f32 %v1395_v1, %v561_v53 }
 0x2b6   : > { %v572_v62 = vsub.s32 6, %v1386_v58  ;;  %v569_v0 = vrot.slane %v545_v46, %v568_v59  ;;  %v590_v4 = vsub.f32 %v1401_v14, %v565_v60  ;;  %v576_v13 = vsub.s32 7, %v1386_v58 }
 0x2b7   : > { %v594_v55 = vmul.f32 1.442695, %v586_v50  ;;  %v596_v56 = vmul.f32 1.442695, %v587_v51  ;;  %v598_v3 = vmul.f32 1.442695, %v588_v54 }
 0x2b8   : > { %v600_v12 = vmul.f32 1.442695, %v589_v61  ;;  %v573_v15 = vrot.slane %v545_v46, %v572_v62  ;;  %v591_v16 = vsub.f32 %v1413_v23, %v569_v0  ;;  %v602_v17 = vmul.f32 1.442695, %v590_v4 }
 0x2b9   : > { %1055 = vpow2.f32 %v594_v55  ;;  %v577_v19 = vrot.slane %v545_v46, %v576_v13 }
 0x2ba   : > { %1057 = vpow2.f32 %v596_v56  ;;  %v592_v1 = vsub.f32 %v1415_v24, %v573_v15  ;;  %v604_v20 = vmul.f32 1.442695, %v591_v16 }
 0x2bb   : > { %1059 = vpow2.f32 %v540_v57  ;;  %v593_v14 = vsub.f32 %v1423_v30, %v577_v19 }
 0x2bc   : > { %1061 = vpow2.f32 %v598_v3  ;;  %v606_v58 = vmul.f32 1.442695, %v592_v1 }
 0x2bd   : > { %1063 = vpow2.f32 %v600_v12  ;;  %v608_v23 = vmul.f32 1.442695, %v593_v14 }
 0x2be   : > { %1065 = vpow2.f32 %v602_v17 }
 0x2bf   : > { %1067 = vpow2.f32 %v604_v20 }
 0x2c0   : > { %1069 = vpow2.f32 %v606_v58 }
 0x2c1   : > { %1071 = vpow2.f32 %v608_v23 }
 0x2c6   : > { %v1056_v18 = vpop.eup %1055 }
 0x2c7   : > { %v1058_v21 = vpop.eup %1057  ;;  %621 = vperm.xlu0 %1038, %v1056_v18  }
 0x2c8   : > { %624 = vperm.xlu1 %1037, %v1058_v21   ;;  %v1449_v22 = vpop.eup %1059 }
 0x2c9   : > { %v1062_v25 = vpop.eup %1061 }
 0x2ca   : > { %v1064_v26 = vpop.eup %1063 }
 0x2cb   : > { %694 = vperm.xlu0 %1038, %v1449_v22   ;;  %v1066_v24 = vpop.eup %1065 }
 0x2cc   : > { %627 = vperm.xlu1 %1037, %v1062_v25   ;;  %v1068_v27 = vpop.eup %1067 }
 0x2cd   : > { %v1070_v28 = vpop.eup %1069 }
 0x2ce   : > { %v1072_v29 = vpop.eup %1071 }
 0x2d0   : > { %630 = vperm.xlu1 %1037, %v1064_v26  }
 0x2d4   : > { %633 = vperm.xlu1 %1037, %v1066_v24  }
 0x2d8   : > { %636 = vperm.xlu1 %1037, %v1068_v27  }
 0x2dc   : > { %639 = vperm.xlu1 %1037, %v1070_v28  }
 0x2e0   : > { %642 = vperm.xlu1 %1037, %v1072_v29  }
 0x342   : > { %v622_v30 = vpop.permute.xlu0 %621 }
 0x343   : > { %v625_v31 = vpop.permute.xlu1 %624  ;;  %v715_v32 = vmul.f32 %v622_v30, %v1326_v2 }
 0x344   : > { %v716_v34 = vmul.f32 %v625_v31, %v1337_v5  ;;  %v651_v56 = vrot.slane %v625_v31, %v1391_v63 }
 0x345   : > { %v724_v36 = vsel %vm267_vm0, %v715_v32, 0.0 }
 0x346   : > { %v695_v35 = vpop.permute.xlu0 %694  ;;  %v731_v40 = vsel %vm267_vm0, %v716_v34, 0.0  ;;  %v725_v41 = vrot.slane %v724_v36, 4 }
 0x347   : > { %v628_v37 = vpop.permute.xlu1 %627  ;;  %v697_v38 = vmul.f32 %v695_v35, %v691_v33  ;;  %v732_v44 = vrot.slane %v731_v40, 4 }
 0x348   : > { %v717_v39 = vmul.f32 %v628_v37, %v1340_v6  ;;  %v726_v45 = vadd.f32 %v725_v41, %v724_v36  ;;  %v655_v60 = vrot.slane %v628_v37, %v1391_v63 }
 0x349   : > { %698 = vst.msk [vmem:[#allocation4] sm:$0xff] %vm267_vm0, %v697_v38  ;;  %v733_v6 = vadd.f32 %v732_v44, %v731_v40 }
 0x34a   : > { %v738_v42 = vsel %vm267_vm0, %v717_v39, 0.0  ;;  %v727_v50 = vrot.slane %v726_v45, 2 }
 0x34b   : > { %v631_v43 = vpop.permute.xlu1 %630  ;;  %v739_v5 = vrot.slane %v738_v42, 4  ;;  %v734_v59 = vrot.slane %v733_v6, 2 }
 0x34c   : > { %v718_v2 = vmul.f32 %v631_v43, %v1356_v10  ;;  %v647_v10 = vrot.slane %v622_v30, %v1391_v63  ;;  %v728_v3 = vadd.f32 %v727_v50, %v726_v45  ;;  %v659_v62 = vrot.slane %v631_v43, %v1391_v63 }
 0x34d   : > { %v740_v51 = vadd.f32 %v739_v5, %v738_v42  ;;  %v735_v19 = vadd.f32 %v734_v59, %v733_v6 }
 0x34e   : > { %v745_v46 = vsel %vm267_vm0, %v718_v2, 0.0  ;;  %v676_v16 = vsel %vm519_vm3, %v651_v56, %v647_v10  ;;  %v729_v14 = vrot.slane %v728_v3, 1 }
 0x34f   : > { %v746_v47 = vrot.slane %v745_v46, 4  ;;  %v634_v48 = vpop.permute.xlu1 %633  ;;  %v677_v1 = vsel %vm521_vm4, %v655_v60, %v676_v16  ;;  %v736_v33 = vrot.slane %v735_v19, 1 }
 0x350   : > { %v719_v49 = vmul.f32 %v634_v48, %v1343_v7  ;;  %v741_v7 = vrot.slane %v740_v51, 2  ;;  %v663_v12 = vrot.slane %v634_v48, %v1391_v63  ;;  %v678_v25 = vsel %vm523_vm5, %v659_v62, %v677_v1  ;;  %v610_v62 = vld [vmem:[#allocation3] sm:$0xff] }
 0x351   : > { %v747_v53 = vadd.f32 %v746_v47, %v745_v46  ;;  %v730_v43 = vadd.f32 %v729_v14, %v728_v3 }
 0x352   : > { %v752_v52 = vsel %vm267_vm0, %v719_v49, 0.0  ;;  %v742_v58 = vadd.f32 %v741_v7, %v740_v51  ;;  %v679_v24 = vsel %vm525_vm6, %v663_v12, %v678_v25 }
 0x353   : > { %v753_v54 = vrot.slane %v752_v52, 4  ;;  %v637_v55 = vpop.permute.xlu1 %636  ;;  %v748_v4 = vrot.slane %v747_v53, 2 }
 0x354   : > { %v720_v57 = vmul.f32 %v637_v55, %v1346_v8  ;;  %v667_v8 = vrot.slane %v637_v55, %v1391_v63  ;;  %v743_v37 = vrot.slane %v742_v58, 1 }
 0x355   : > { %v754_v61 = vadd.f32 %v753_v54, %v752_v52  ;;  %v749_v26 = vadd.f32 %v748_v4, %v747_v53 }
 0x356   : > { %v759_v0 = vsel %vm267_vm0, %v720_v57, 0.0  ;;  %v680_v32 = vsel %vm527_vm7, %v667_v8, %v679_v24  ;;  %v744_v46 = vadd.f32 %v743_v37, %v742_v58 }
 0x357   : > { %v760_v13 = vrot.slane %v759_v0, 4  ;;  %v640_v15 = vpop.permute.xlu1 %639  ;;  %v755_v17 = vrot.slane %v754_v61, 2  ;;  %v750_v40 = vrot.slane %v749_v26, 1 }
 0x358   : > { %v721_v18 = vmul.f32 %v640_v15, %v1351_v9  ;;  %v671_v21 = vrot.slane %v640_v15, %v1391_v63 }
 0x359   : > { %v761_v20 = vadd.f32 %v760_v13, %v759_v0  ;;  %v756_v30 = vadd.f32 %v755_v17, %v754_v61  ;;  %v751_v47 = vadd.f32 %v750_v40, %v749_v26  ;;  %v723_v61 = vld [vmem:[#allocation4] sm:$0xff]  ;;  %v611_v0 = vmul.f32 %v1449_v22, %v610_v62 }
 0x35a   : > { %v766_v23 = vsel %vm267_vm0, %v721_v18, 0.0  ;;  %v681_v36 = vsel %vm529_vm8, %v671_v21, %v680_v32 }
 0x35b   : > { %v762_v27 = vrot.slane %v761_v20, 2  ;;  %v767_v28 = vrot.slane %v766_v23, 4  ;;  %v643_v29 = vpop.permute.xlu1 %642  ;;  %v757_v2 = vrot.slane %v756_v30, 1 }
 0x35c   : > { %v675_v9 = vrot.slane %v643_v29, %v1391_v63  ;;  %v722_v31 = vmul.f32 %v643_v29, %v1365_v11  ;;  %v737_v11 = vadd.f32 %v736_v33, %v735_v19 }
 0x35d   : > { %v763_v34 = vadd.f32 %v762_v27, %v761_v20  ;;  %v768_v35 = vadd.f32 %v767_v28, %v766_v23  ;;  %v758_v6 = vadd.f32 %v757_v2, %v756_v30 }
 0x35e   : > { %v773_v38 = vsel %vm267_vm0, %v722_v31, 0.0  ;;  %v682_v39 = vsel %vm531_vm9, %v675_v9, %v681_v36  ;;  %v788_v50 = vsel %vm519_vm3, %v737_v11, %v730_v43 }
 0x35f   : > { %v769_v41 = vrot.slane %v768_v35, 2  ;;  %v774_v42 = vrot.slane %v773_v38, 4  ;;  %v684_v63 = vsel %vm534_vm10, %v682_v39, 0.0  ;;  %v764_v44 = vrot.slane %v763_v34, 1 }
 0x360   : > { %685 = vadd.xlane.f32.xlu1 %v684_v63  ;;  %v789_v53 = vsel %vm521_vm4, %v744_v46, %v788_v50 }
 0x361   : > { %v770_v45 = vadd.f32 %v769_v41, %v768_v35  ;;  %v775_v5 = vadd.f32 %v774_v42, %v773_v38  ;;  %v765_v51 = vadd.f32 %v764_v44, %v763_v34  ;;  %v790_v55 = vsel %vm523_vm5, %v751_v47, %v789_v53 }
 0x362   : > { %v791_v10 = vsel %vm525_vm6, %v758_v6, %v790_v55 }
 0x363   : > { %v771_v48 = vrot.slane %v770_v45, 1  ;;  %v776_v49 = vrot.slane %v775_v5, 2  ;;  %v792_v57 = vsel %vm527_vm7, %v765_v51, %v791_v10 }
 0x365   : > { %v777_v52 = vadd.f32 %v776_v49, %v775_v5  ;;  %v772_v54 = vadd.f32 %v771_v48, %v770_v45 }
 0x367   : > { %v778_v56 = vrot.slane %v777_v52, 1  ;;  %v793_v60 = vsel %vm529_vm8, %v772_v54, %v792_v57 }
 0x369   : > { %v779_v59 = vadd.f32 %v778_v56, %v777_v52 }
 0x36b   : > { %v794_v3 = vsel %vm531_vm9, %v779_v59, %v793_v60 }
 0x36c   : > { %v796_v7 = vadd.f32 %v794_v3, %v723_v61 }
 0x36e   : > { %797 = vst.msk [vmem:[#allocation4] sm:$0xff] %vm267_vm0, %v796_v7 }
 0x375   : > { %v803_v16 = vld [vmem:[#allocation4] sm:$0xff] }
 0x3e9   : > { %v686_v4 = vpop.xlane.xlu1 %685 }
 0x3ea   : > { %v687_v12 = vadd.f32 %v686_v4, %v611_v0 }
 0x3ec   : > { %689 = vst.msk [vmem:[#allocation3] sm:$0xff] %vm264_vm2, %v687_v12 }
 0x3f3   : > { %v801_v13 = vld [vmem:[#allocation3] sm:$0xff] }
 0x3f4   : > { %1073 = vrcp.f32 %v801_v13 }
 0x401   : > { %v1074_v15 = vpop.eup %1073 }
 0x402   : > { %806 = vperm.xlu0 %1038, %v1074_v15  }
 0x47d   : > { %v807_v17 = vpop.permute.xlu0 %806 }
 0x47e   : > { %v809_v8 = vmul.f32 %v807_v17, %v803_v16 }
 0x480   : > { %810 = vst.msk [vmem:[%s258_s15] sm:$0xff] %vm267_vm0, %v809_v8 }
 0x481   : > { %1116 = shalt.err (!%p1113_p6)
}
 0x482   : > { %s1117_s30 = scalar_lea.hbm %s823_s19, 128  ;;  %s1121_s10 = scalar_lea.hbm %s1543_s5, 256 }
 0x483   : > { %p1118_p7 = scmp.ne.s32.totalorder %s823_s19, %s1117_s30  ;;  %p1122_p13 = scmp.lt.s32.totalorder %s823_s19, %s1543_s5 }
 0x484   : > { %p1123_p2 = scmp.lt.s32.totalorder %s1121_s10, %s1117_s30 }
 0x485   : > { %p1119_p10 = pnand %p1118_p7, %p1276_p9 }
 0x486   : > { %p1124_p8 = por %p1123_p2, %p1122_p13 }
 0x487   : > { %p1120_p4 = pneg %p1119_p10 }
 0x489   : > { %p1125_p12 = pnand %p1124_p8, %p1120_p4 }
 0x48b   : > { %1128 = shalt.err (!%p1125_p12)
}
 0x48c   : > { %972 = dma.vmem_to_hbm [thread:$0]  (%p1276_p9), %s826_s16, 128, %s823_s19, %s812_s6  }
 0x48d PF: > { %s837_s14 = sand.u32 1, %s1163_s20   ;;  %p1549_p0 = scmp.ge.s32.totalorder %s1183_s25, 2 }
 0x48e   : > { %s838_s15 = scalar_lea.sflag [#allocation8], %s837_s14 }
 0x48f   : > { %p979_p1 = pnand %p1549_p0, %p1283_p11 }
 0x491   : > { %p980_p3 = pneg %p979_p1 }
 0x493   : > { %1158 = dma.done.wait (%p980_p3), %s838_s15, 128  }
 0x494   : > { %1160 = vsyncadd (%p980_p3), %s838_s15, 4294967168  ;;  %s22_s25 = sadd.s32 1, %s1183_s25   ;;  %s1550_s20 = smov %s1167_s21 }
 0x495   : > { %p19_p5 = scmp.ge.s32.totalorder %s22_s25, 4   ;;  %s1551_s21 = smov %s1171_s22 }
 0x496   : > { %s1552_s22 = smov %s1281_s8  ;;  %s1553_s23 = smov %s1179_s24 }
 0x497   : > { %s1554_s24 = smov %s1556_s27  ;;  %21 = sbr.rel (!%p19_p5) target bundleno = 8 (0x8), region = 93 }
 0x49c   :  { %843 = vsyncpa [#allocation7], 1 }
 0x49d   :  { %845 = vsyncpa [#allocation7 + $0x1], 1 }
 0x49e   :  { %846 = vsyncpa [#allocation8], 1 }
 0x49f   :  { %848 = vsyncpa [#allocation8 + $0x1], 1 }

</bundles_post_ra>
